<compile_context>
chip_gen: v6e
topology: v6e:2x2x1
jax: 0.10.0
libtpu: 0.0.40
codegen_flags: <defaults>
</compile_context>

<pallas_src>
import functools

import jax
import jax.numpy as jnp
from jax.experimental import pallas as pl
from jax.experimental.pallas import tpu as pltpu


def _round_up(n, m):
    return ((n + m - 1) // m) * m


def _vmem_physical_bytes():
    """Best-effort physical VMEM query; conservative (v7x) fallback."""
    try:
        info = pltpu.get_tpu_info()
        for attr in ("vmem_capacity_bytes", "vmem_bytes", "vmem_capacity"):
            v = getattr(info, attr, None)
            if v:
                return int(v)
    except Exception:
        pass
    return 64 * 2 ** 20


def nfm_kernel(x_ref, wcat_ref, w1_ref, w2_ref, bl_ref, b1_ref, b2_ref,
               slab_ref, acc_ref, *, o_pad):
    """One (batch-tile, F-tile) step of the NFM forward.

    Stage-1 matmul x @ [Wl^T | E] is accumulated in f32 VMEM scratch over the
    F axis; bias add, interaction MLP and lane-dense stores run only on the
    last F step.  All lane dims are pre-padded to multiples of 128.
    """
    k = pl.program_id(1)

    @pl.when(k == 0)
    def _():
        acc_ref[...] = jnp.zeros_like(acc_ref)

    # Fused stage 1: x @ [Wl^T | E]  (bf16/f32 operands, f32 MXU accumulate).
    acc_ref[...] += jnp.dot(x_ref[...], wcat_ref[...],
                            preferred_element_type=jnp.float32)

    @pl.when(k == pl.num_programs(1) - 1)
    def _():
        s1 = acc_ref[...]                                    # [TB, O_pad+K_pad]
        linear_out = s1[:, :o_pad] + bl_ref[...]             # [TB, O_pad]
        we = s1[:, o_pad:]                                   # [TB, K_pad]

        # Interaction MLP: ReLU(we @ W1^T + b1) @ W2^T + b2  (f32 elementwise).
        h = jnp.dot(we.astype(w1_ref.dtype), w1_ref[...],
                    preferred_element_type=jnp.float32) + b1_ref[...]
        h = jnp.maximum(h, 0.0)
        inter = jnp.dot(h.astype(w2_ref.dtype), w2_ref[...],
                        preferred_element_type=jnp.float32) + b2_ref[...]

        # Lane-dense packed output slab: [ linear | inter | we ], 128-aligned.
        # (linear + inter) is formed in the wrapper to save HBM writeback.
        slab_ref[:, 0 * o_pad:1 * o_pad] = linear_out
        slab_ref[:, 1 * o_pad:2 * o_pad] = inter
        slab_ref[:, 2 * o_pad:] = we


def prepare_params(params, *, use_bf16=True):
    """One-time padding / transposition / fusion of the model weights (hoisted
    out of the per-call path)."""
    Wl, bl = params["linear_w"], params["linear_b"]          # [O, F], [O]
    E = params["emb"]                                         # [F, K]
    W1, b1 = params["mlp1_w"], params["mlp1_b"]               # [K, K], [K]
    W2, b2 = params["mlp2_w"], params["mlp2_b"]               # [O, K], [O]
    O, F = Wl.shape
    K = E.shape[1]

    O_pad = _round_up(O, 128)
    K_pad = _round_up(K, 128)
    F_pad = _round_up(F, 128)
    mm_dtype = jnp.bfloat16 if use_bf16 else jnp.float32

    wl_t = jnp.zeros((F_pad, O_pad), jnp.float32).at[:F, :O].set(Wl.T)
    Ep = jnp.zeros((F_pad, K_pad), jnp.float32).at[:F, :K].set(E)
    w_cat = jnp.concatenate([wl_t, Ep], axis=1).astype(mm_dtype)   # [F_pad, O_pad+K_pad]
    w1_t = jnp.zeros((K_pad, K_pad), jnp.float32).at[:K, :K].set(W1.T).astype(mm_dtype)
    w2_t = jnp.zeros((K_pad, O_pad), jnp.float32).at[:K, :O].set(W2.T).astype(mm_dtype)
    bl2 = jnp.zeros((1, O_pad), jnp.float32).at[0, :O].set(bl)
    b12 = jnp.zeros((1, K_pad), jnp.float32).at[0, :K].set(b1)
    b22 = jnp.zeros((1, O_pad), jnp.float32).at[0, :O].set(b2)

    return {
        "w_cat": w_cat, "w1_t": w1_t, "w2_t": w2_t,
        "bl": bl2, "b1": b12, "b2": b22,
        "O": O, "K": K, "F": F,
        "O_pad": O_pad, "K_pad": K_pad, "F_pad": F_pad,
        "mm_dtype": mm_dtype,
    }


def _choose_f_tile(F_pad, width, itemsize, budget_bytes):
    """Largest multiple of 128 dividing F_pad whose (buffered) w_cat tile fits."""
    if F_pad * width * itemsize <= budget_bytes:
        return F_pad
    best = 128
    d = 128
    while d <= F_pad:
        if F_pad % d == 0 and 2 * d * width * itemsize <= budget_bytes:
            best = d
        d += 128
    return best


def neural_factorization_forward(x, prepared, *, batch_tile=256):
    """x: [B, F] float32.  prepared: output of prepare_params()."""
    p = prepared
    B, F = x.shape
    assert F == p["F"], "feature dim mismatch with prepared params"
    O, K = p["O"], p["K"]
    O_pad, K_pad, F_pad = p["O_pad"], p["K_pad"], p["F_pad"]
    mm_dtype = p["mm_dtype"]
    itemsize = jnp.dtype(mm_dtype).itemsize
    slab_w = 2 * O_pad + K_pad

    # Batch tile tied to sublane packing (16 rows bf16 / 8 rows f32); split into
    # >=2 grid steps when possible so ("parallel",) feeds both v7x TensorCores.
    row_mult = 16 if itemsize == 2 else 8
    batch_tile = max(row_mult, _round_up(batch_tile, row_mult))
    TB = min(batch_tile, _round_up(B, row_mult))
    half_tb = _round_up((B + 1) // 2, row_mult)
    if TB >= B and half_tb < TB:
        TB = half_tb
    B_pad = _round_up(B, TB)

    # Per-chip VMEM budget: ~100 MiB on 128 MiB chips (v5e/v6e), 48 MiB on v7x.
    phys = _vmem_physical_bytes()
    cap = 100 * 2 ** 20 if phys > 80 * 2 ** 20 else 48 * 2 ** 20
    TF = _choose_f_tile(F_pad, O_pad + K_pad, itemsize, cap // 3)
    n_k = F_pad // TF

    est = (2 * TB * TF * itemsize                  # x tiles
           + 2 * TB * slab_w * 4                   # output slab tiles
           + 2 * TF * (O_pad + K_pad) * itemsize   # fused stage-1 weight
           + 2 * K_pad * K_pad * itemsize          # W1^T
           + 2 * K_pad * O_pad * itemsize          # W2^T
           + 2 * (2 * O_pad + K_pad) * 4           # biases
           + TB * (O_pad + K_pad) * 4)             # f32 accumulator scratch
    vmem_limit = int(min(max(2 * est, 16 * 2 ** 20), cap))

    xp = (jnp.zeros((B_pad, F_pad), jnp.float32).at[:B, :F].set(x)
          .astype(mm_dtype))

    grid = (B_pad // TB, n_k)
    kernel = functools.partial(nfm_kernel, o_pad=O_pad)

    def const_spec(shape, single_buffer):
        # Grid-invariant block: fetched once; single-buffer to halve VMEM cost.
        if single_buffer:
            return pl.BlockSpec(shape, lambda i, k: (0, 0),
                                pipeline_mode=pl.Buffered(1))
        return pl.BlockSpec(shape, lambda i, k: (0, 0))

    def run(single_buffer):
        if n_k == 1:
            wcat_spec = const_spec((TF, O_pad + K_pad), single_buffer)
        else:
            # Streamed over the F axis -> keep default double buffering.
            wcat_spec = pl.BlockSpec((TF, O_pad + K_pad), lambda i, k: (k, 0))
        in_specs = [
            pl.BlockSpec((TB, TF), lambda i, k: (i, k)),      # x (streamed)
            wcat_spec,                                        # [Wl^T | E]
            const_spec((K_pad, K_pad), single_buffer),        # W1^T
            const_spec((K_pad, O_pad), single_buffer),        # W2^T
            const_spec((1, O_pad), single_buffer),            # bl
            const_spec((1, K_pad), single_buffer),            # b1
            const_spec((1, O_pad), single_buffer),            # b2
        ]
        return pl.pallas_call(
            kernel,
            out_shape=jax.ShapeDtypeStruct((B_pad, slab_w), jnp.float32),
            grid=grid,
            in_specs=in_specs,
            out_specs=pl.BlockSpec((TB, slab_w), lambda i, k: (i, 0)),
            scratch_shapes=[pltpu.VMEM((TB, O_pad + K_pad), jnp.float32)],
            compiler_params=pltpu.CompilerParams(
                dimension_semantics=("parallel", "arbitrary"),
                vmem_limit_bytes=vmem_limit,
            ),
        )(xp, p["w_cat"], p["w1_t"], p["w2_t"], p["bl"], p["b1"], p["b2"])

    try:
        slab = run(True)       # single-buffered grid-invariant weights
    except Exception:
        slab = run(False)      # fallback if pipeline_mode=pl.Buffered unsupported

    # Unpack the lane-dense slab; form the sum in the wrapper (fuses with slice).
    lin = slab[:B, 0 * O_pad:0 * O_pad + O]
    inter = slab[:B, 1 * O_pad:1 * O_pad + O]
    we = slab[:B, 2 * O_pad:2 * O_pad + K]
    return lin + inter, lin, inter, we


def make_params(key, num_features, k_dim, output_dim):
    """Deterministic synthetic parameters matching the PyTorch module shapes."""
    ks = jax.random.split(key, 7)
    return {
        "emb":      jax.random.normal(ks[0], (num_features, k_dim), jnp.float32) * 0.1,
        "linear_w": jax.random.normal(ks[1], (output_dim, num_features), jnp.float32) * 0.1,
        "linear_b": jax.random.normal(ks[2], (output_dim,), jnp.float32) * 0.1,
        "mlp1_w":   jax.random.normal(ks[3], (k_dim, k_dim), jnp.float32) * 0.1,
        "mlp1_b":   jax.random.normal(ks[4], (k_dim,), jnp.float32) * 0.1,
        "mlp2_w":   jax.random.normal(ks[5], (output_dim, k_dim), jnp.float32) * 0.1,
        "mlp2_b":   jax.random.normal(ks[6], (output_dim,), jnp.float32) * 0.1,
    }


def reference_forward(x, p):
    """Plain-JAX reference mirroring the PyTorch semantics."""
    linear_out = x @ p["linear_w"].T + p["linear_b"]
    we = x @ p["emb"]
    h = jnp.maximum(we @ p["mlp1_w"].T + p["mlp1_b"], 0.0)
    inter = h @ p["mlp2_w"].T + p["mlp2_b"]
    return (linear_out + inter, linear_out, inter, we)


if __name__ == "__main__":
    # Small shapes consistent with the module's forward.
    B, num_features, k_dim, output_dim = 8, 32, 16, 8

    key = jax.random.PRNGKey(0)
    kx, kp = jax.random.split(key)
    x = jax.random.normal(kx, (B, num_features), jnp.float32)
    params = make_params(kp, num_features, k_dim, output_dim)

    with jax.default_matmul_precision("float32"):
        refs = reference_forward(x, params)

    # Exactness check of the padding / fusion scheme (f32 operands).
    prep_f32 = prepare_params(params, use_bf16=False)
    outs_f32 = jax.block_until_ready(neural_factorization_forward(x, prep_f32))
    for o, r in zip(outs_f32, refs):
        assert o.shape == r.shape and o.dtype == r.dtype
        assert jnp.allclose(o, r, atol=1e-3, rtol=1e-3), "f32 mismatch vs reference"

    # Default fast path: bf16 MXU operands, f32 accumulation / elementwise.
    prep = prepare_params(params, use_bf16=True)
    outs = jax.block_until_ready(neural_factorization_forward(x, prep))
    for o, r in zip(outs, refs):
        assert o.shape == r.shape and o.dtype == r.dtype
        assert jnp.allclose(o, r, atol=2e-2, rtol=2e-2), "bf16 mismatch vs reference"

    print("KERNEL_OK")
</pallas_src>

<mosaic_0001>
module attributes {stable_mosaic.version = 11 : i64} {
  func.func @nfm_kernel(%arg0: i32, %arg1: i32, %arg2: memref<8x128xf32, #tpu.memory_space<vmem>>, %arg3: memref<128x256xf32, #tpu.memory_space<vmem>>, %arg4: memref<128x128xf32, #tpu.memory_space<vmem>>, %arg5: memref<128x128xf32, #tpu.memory_space<vmem>>, %arg6: memref<1x128xf32, #tpu.memory_space<vmem>>, %arg7: memref<1x128xf32, #tpu.memory_space<vmem>>, %arg8: memref<1x128xf32, #tpu.memory_space<vmem>>, %arg9: memref<8x384xf32, #tpu.memory_space<vmem>>, %arg10: memref<8x256xf32, #tpu.memory_space<vmem>>) attributes {dimension_semantics = [#tpu.dimension_semantics<parallel>, #tpu.dimension_semantics<arbitrary>], iteration_bounds = array<i64: 1, 1>, scalar_prefetch = 0 : i64, scratch_operands = 1 : i64, tpu.core_type = #tpu.core_type<tc>, window_params = [{transform_indices = @transform_0, window_bounds = array<i64: 8, 128>}, {pipeline_mode = #tpu.pipeline_mode<synchronous>, transform_indices = @transform_1, window_bounds = array<i64: 128, 256>}, {pipeline_mode = #tpu.pipeline_mode<synchronous>, transform_indices = @transform_2, window_bounds = array<i64: 128, 128>}, {pipeline_mode = #tpu.pipeline_mode<synchronous>, transform_indices = @transform_3, window_bounds = array<i64: 128, 128>}, {pipeline_mode = #tpu.pipeline_mode<synchronous>, transform_indices = @transform_4, window_bounds = array<i64: 1, 128>}, {pipeline_mode = #tpu.pipeline_mode<synchronous>, transform_indices = @transform_5, window_bounds = array<i64: 1, 128>}, {pipeline_mode = #tpu.pipeline_mode<synchronous>, transform_indices = @transform_6, window_bounds = array<i64: 1, 128>}, {transform_indices = @transform_7, window_bounds = array<i64: 8, 384>}]} {
    %c0_i32 = arith.constant 0 : i32
    %0 = arith.cmpi eq, %arg1, %c0_i32 : i32
    %1 = arith.extui %0 : i1 to i32
    %c0_i32_0 = arith.constant 0 : i32
    %2 = arith.cmpi ne, %1, %c0_i32_0 : i32
    scf.if %2 {
      %cst_10 = arith.constant 0.000000e+00 : f32
      %12 = vector.broadcast %cst_10 : f32 to vector<8x256xf32>
      %c0_11 = arith.constant 0 : index
      %c0_12 = arith.constant 0 : index
      %13 = vector.load %arg10[%c0_11, %c0_12] : memref<8x256xf32, #tpu.memory_space<vmem>>, vector<8x256xf32>
      tpu.vector_store %arg10[%c0_11, %c0_12], %12 {strides = array<i32>} : memref<8x256xf32, #tpu.memory_space<vmem>>, vector<8x256xf32>,
    } else {
    }
    %c0 = arith.constant 0 : index
    %c0_1 = arith.constant 0 : index
    %3 = vector.load %arg10[%c0, %c0_1] : memref<8x256xf32, #tpu.memory_space<vmem>>, vector<8x256xf32>
    %c0_2 = arith.constant 0 : index
    %c0_3 = arith.constant 0 : index
    %4 = vector.load %arg2[%c0_2, %c0_3] : memref<8x128xf32, #tpu.memory_space<vmem>>, vector<8x128xf32>
    %c0_4 = arith.constant 0 : index
    %c0_5 = arith.constant 0 : index
    %5 = vector.load %arg3[%c0_4, %c0_5] : memref<128x256xf32, #tpu.memory_space<vmem>>, vector<128x256xf32>
    %cst = arith.constant dense<0.000000e+00> : vector<8x256xf32>
    %6 = tpu.matmul %4, %5, %cst {dimension_numbers = #tpu.dot_dimension_numbers<[1], [0], [0], [1], [0, 0, 1, 1], [], []>} : vector<8x128xf32>, vector<128x256xf32>, vector<8x256xf32> -> vector<8x256xf32>
    %7 = arith.addf %3, %6 : vector<8x256xf32>
    %c0_6 = arith.constant 0 : index
    %c0_7 = arith.constant 0 : index
    %8 = vector.load %arg10[%c0_6, %c0_7] : memref<8x256xf32, #tpu.memory_space<vmem>>, vector<8x256xf32>
    tpu.vector_store %arg10[%c0_6, %c0_7], %7 {strides = array<i32>} : memref<8x256xf32, #tpu.memory_space<vmem>>, vector<8x256xf32>,
    %c0_i32_8 = arith.constant 0 : i32
    %9 = arith.cmpi eq, %arg1, %c0_i32_8 : i32
    %10 = arith.extui %9 : i1 to i32
    %c0_i32_9 = arith.constant 0 : i32
    %11 = arith.cmpi ne, %10, %c0_i32_9 : i32
    scf.if %11 {
      %c0_10 = arith.constant 0 : index
      %c0_11 = arith.constant 0 : index
      %12 = vector.load %arg10[%c0_10, %c0_11] : memref<8x256xf32, #tpu.memory_space<vmem>>, vector<8x256xf32>
      %13 = vector.extract_strided_slice %12 {offsets = [0, 0], sizes = [8, 128], strides = [1, 1]} : vector<8x256xf32> to vector<8x128xf32>
      %c0_12 = arith.constant 0 : index
      %c0_13 = arith.constant 0 : index
      %14 = vector.load %arg6[%c0_12, %c0_13] : memref<1x128xf32, #tpu.memory_space<vmem>>, vector<1x128xf32>
      %15 = vector.broadcast %14 : vector<1x128xf32> to vector<8x128xf32>
      %16 = arith.addf %13, %15 : vector<8x128xf32>
      %17 = vector.extract_strided_slice %12 {offsets = [0, 128], sizes = [8, 128], strides = [1, 1]} : vector<8x256xf32> to vector<8x128xf32>
      %c0_14 = arith.constant 0 : index
      %c0_15 = arith.constant 0 : index
      %18 = vector.load %arg4[%c0_14, %c0_15] : memref<128x128xf32, #tpu.memory_space<vmem>>, vector<128x128xf32>
      %cst_16 = arith.constant dense<0.000000e+00> : vector<8x128xf32>
      %19 = tpu.matmul %17, %18, %cst_16 {dimension_numbers = #tpu.dot_dimension_numbers<[1], [0], [0], [1], [0, 0, 1, 1], [], []>} : vector<8x128xf32>, vector<128x128xf32>, vector<8x128xf32> -> vector<8x128xf32>
      %c0_17 = arith.constant 0 : index
      %c0_18 = arith.constant 0 : index
      %20 = vector.load %arg7[%c0_17, %c0_18] : memref<1x128xf32, #tpu.memory_space<vmem>>, vector<1x128xf32>
      %21 = vector.broadcast %20 : vector<1x128xf32> to vector<8x128xf32>
      %22 = arith.addf %19, %21 : vector<8x128xf32>
      %cst_19 = arith.constant 0.000000e+00 : f32
      %23 = vector.broadcast %cst_19 : f32 to vector<8x128xf32>
      %24 = arith.maximumf %22, %23 : vector<8x128xf32>
      %c0_20 = arith.constant 0 : index
      %c0_21 = arith.constant 0 : index
      %25 = vector.load %arg5[%c0_20, %c0_21] : memref<128x128xf32, #tpu.memory_space<vmem>>, vector<128x128xf32>
      %cst_22 = arith.constant dense<0.000000e+00> : vector<8x128xf32>
      %26 = tpu.matmul %24, %25, %cst_22 {dimension_numbers = #tpu.dot_dimension_numbers<[1], [0], [0], [1], [0, 0, 1, 1], [], []>} : vector<8x128xf32>, vector<128x128xf32>, vector<8x128xf32> -> vector<8x128xf32>
      %c0_23 = arith.constant 0 : index
      %c0_24 = arith.constant 0 : index
      %27 = vector.load %arg8[%c0_23, %c0_24] : memref<1x128xf32, #tpu.memory_space<vmem>>, vector<1x128xf32>
      %28 = vector.broadcast %27 : vector<1x128xf32> to vector<8x128xf32>
      %29 = arith.addf %26, %28 : vector<8x128xf32>
      %c0_25 = arith.constant 0 : index
      %c0_26 = arith.constant 0 : index
      %30 = vector.load %arg9[%c0_25, %c0_26] : memref<8x384xf32, #tpu.memory_space<vmem>>, vector<8x128xf32>
      tpu.vector_store %arg9[%c0_25, %c0_26], %16 {strides = array<i32>} : memref<8x384xf32, #tpu.memory_space<vmem>>, vector<8x128xf32>,
      %c0_27 = arith.constant 0 : index
      %c128 = arith.constant 128 : index
      %31 = vector.load %arg9[%c0_27, %c128] : memref<8x384xf32, #tpu.memory_space<vmem>>, vector<8x128xf32>
      tpu.vector_store %arg9[%c0_27, %c128], %29 {strides = array<i32>} : memref<8x384xf32, #tpu.memory_space<vmem>>, vector<8x128xf32>,
      %c0_28 = arith.constant 0 : index
      %c256 = arith.constant 256 : index
      %32 = vector.load %arg9[%c0_28, %c256] : memref<8x384xf32, #tpu.memory_space<vmem>>, vector<8x128xf32>
      tpu.vector_store %arg9[%c0_28, %c256], %17 {strides = array<i32>} : memref<8x384xf32, #tpu.memory_space<vmem>>, vector<8x128xf32>,
    } else {
    }
    return
  }
  func.func @transform_0(%arg0: i32, %arg1: i32) -> (i32, i32) {
    %c0_i32 = arith.constant 0 : i32
    return %arg0, %arg1 : i32, i32
  }
  func.func @transform_1(%arg0: i32, %arg1: i32) -> (i32, i32) {
    %c0_i32 = arith.constant 0 : i32
    %c0_i32_0 = arith.constant 0 : i32
    %c0_i32_1 = arith.constant 0 : i32
    return %c0_i32, %c0_i32_0 : i32, i32
  }
  func.func @transform_2(%arg0: i32, %arg1: i32) -> (i32, i32) {
    %c0_i32 = arith.constant 0 : i32
    %c0_i32_0 = arith.constant 0 : i32
    %c0_i32_1 = arith.constant 0 : i32
    return %c0_i32, %c0_i32_0 : i32, i32
  }
  func.func @transform_3(%arg0: i32, %arg1: i32) -> (i32, i32) {
    %c0_i32 = arith.constant 0 : i32
    %c0_i32_0 = arith.constant 0 : i32
    %c0_i32_1 = arith.constant 0 : i32
    return %c0_i32, %c0_i32_0 : i32, i32
  }
  func.func @transform_4(%arg0: i32, %arg1: i32) -> (i32, i32) {
    %c0_i32 = arith.constant 0 : i32
    %c0_i32_0 = arith.constant 0 : i32
    %c0_i32_1 = arith.constant 0 : i32
    return %c0_i32, %c0_i32_0 : i32, i32
  }
  func.func @transform_5(%arg0: i32, %arg1: i32) -> (i32, i32) {
    %c0_i32 = arith.constant 0 : i32
    %c0_i32_0 = arith.constant 0 : i32
    %c0_i32_1 = arith.constant 0 : i32
    return %c0_i32, %c0_i32_0 : i32, i32
  }
  func.func @transform_6(%arg0: i32, %arg1: i32) -> (i32, i32) {
    %c0_i32 = arith.constant 0 : i32
    %c0_i32_0 = arith.constant 0 : i32
    %c0_i32_1 = arith.constant 0 : i32
    return %c0_i32, %c0_i32_0 : i32, i32
  }
  func.func @transform_7(%arg0: i32, %arg1: i32) -> (i32, i32) {
    %c0_i32 = arith.constant 0 : i32
    %c0_i32_0 = arith.constant 0 : i32
    return %arg0, %c0_i32 : i32, i32
  }
}

module attributes {stable_mosaic.version = 11 : i64} {
  func.func @nfm_kernel(%arg0: i32, %arg1: i32, %arg2: memref<8x128xf32, #tpu.memory_space<vmem>>, %arg3: memref<128x256xf32, #tpu.memory_space<vmem>>, %arg4: memref<128x128xf32, #tpu.memory_space<vmem>>, %arg5: memref<128x128xf32, #tpu.memory_space<vmem>>, %arg6: memref<1x128xf32, #tpu.memory_space<vmem>>, %arg7: memref<1x128xf32, #tpu.memory_space<vmem>>, %arg8: memref<1x128xf32, #tpu.memory_space<vmem>>, %arg9: memref<8x384xf32, #tpu.memory_space<vmem>>, %arg10: memref<8x256xf32, #tpu.memory_space<vmem>>) attributes {dimension_semantics = [#tpu.dimension_semantics<parallel>, #tpu.dimension_semantics<arbitrary>], iteration_bounds = array<i64: 1, 1>, scalar_prefetch = 0 : i64, scratch_operands = 1 : i64, tpu.core_type = #tpu.core_type<tc>, window_params = [{transform_indices = @transform_0, window_bounds = array<i64: 8, 128>}, {pipeline_mode = #tpu.pipeline_mode<synchronous>, transform_indices = @transform_1, window_bounds = array<i64: 128, 256>}, {pipeline_mode = #tpu.pipeline_mode<synchronous>, transform_indices = @transform_2, window_bounds = array<i64: 128, 128>}, {pipeline_mode = #tpu.pipeline_mode<synchronous>, transform_indices = @transform_3, window_bounds = array<i64: 128, 128>}, {pipeline_mode = #tpu.pipeline_mode<synchronous>, transform_indices = @transform_4, window_bounds = array<i64: 1, 128>}, {pipeline_mode = #tpu.pipeline_mode<synchronous>, transform_indices = @transform_5, window_bounds = array<i64: 1, 128>}, {pipeline_mode = #tpu.pipeline_mode<synchronous>, transform_indices = @transform_6, window_bounds = array<i64: 1, 128>}, {transform_indices = @transform_7, window_bounds = array<i64: 8, 384>}]} {
    %c0_i32 = arith.constant 0 : i32
    %0 = arith.cmpi eq, %arg1, %c0_i32 : i32
    %1 = arith.extui %0 : i1 to i32
    %c0_i32_0 = arith.constant 0 : i32
    %2 = arith.cmpi ne, %1, %c0_i32_0 : i32
    scf.if %2 {
      %cst_10 = arith.constant 0.000000e+00 : f32
      %12 = vector.broadcast %cst_10 : f32 to vector<8x256xf32>
      %c0_11 = arith.constant 0 : index
      %c0_12 = arith.constant 0 : index
      %13 = vector.load %arg10[%c0_11, %c0_12] : memref<8x256xf32, #tpu.memory_space<vmem>>, vector<8x256xf32>
      tpu.vector_store %arg10[%c0_11, %c0_12], %12 {strides = array<i32>} : memref<8x256xf32, #tpu.memory_space<vmem>>, vector<8x256xf32>,
    } else {
    }
    %c0 = arith.constant 0 : index
    %c0_1 = arith.constant 0 : index
    %3 = vector.load %arg10[%c0, %c0_1] : memref<8x256xf32, #tpu.memory_space<vmem>>, vector<8x256xf32>
    %c0_2 = arith.constant 0 : index
    %c0_3 = arith.constant 0 : index
    %4 = vector.load %arg2[%c0_2, %c0_3] : memref<8x128xf32, #tpu.memory_space<vmem>>, vector<8x128xf32>
    %c0_4 = arith.constant 0 : index
    %c0_5 = arith.constant 0 : index
    %5 = vector.load %arg3[%c0_4, %c0_5] : memref<128x256xf32, #tpu.memory_space<vmem>>, vector<128x256xf32>
    %cst = arith.constant dense<0.000000e+00> : vector<8x256xf32>
    %6 = tpu.matmul %4, %5, %cst {dimension_numbers = #tpu.dot_dimension_numbers<[1], [0], [0], [1], [0, 0, 1, 1], [], []>} : vector<8x128xf32>, vector<128x256xf32>, vector<8x256xf32> -> vector<8x256xf32>
    %7 = arith.addf %3, %6 : vector<8x256xf32>
    %c0_6 = arith.constant 0 : index
    %c0_7 = arith.constant 0 : index
    %8 = vector.load %arg10[%c0_6, %c0_7] : memref<8x256xf32, #tpu.memory_space<vmem>>, vector<8x256xf32>
    tpu.vector_store %arg10[%c0_6, %c0_7], %7 {strides = array<i32>} : memref<8x256xf32, #tpu.memory_space<vmem>>, vector<8x256xf32>,
    %c0_i32_8 = arith.constant 0 : i32
    %9 = arith.cmpi eq, %arg1, %c0_i32_8 : i32
    %10 = arith.extui %9 : i1 to i32
    %c0_i32_9 = arith.constant 0 : i32
    %11 = arith.cmpi ne, %10, %c0_i32_9 : i32
    scf.if %11 {
      %c0_10 = arith.constant 0 : index
      %c0_11 = arith.constant 0 : index
      %12 = vector.load %arg10[%c0_10, %c0_11] : memref<8x256xf32, #tpu.memory_space<vmem>>, vector<8x256xf32>
      %13 = vector.extract_strided_slice %12 {offsets = [0, 0], sizes = [8, 128], strides = [1, 1]} : vector<8x256xf32> to vector<8x128xf32>
      %c0_12 = arith.constant 0 : index
      %c0_13 = arith.constant 0 : index
      %14 = vector.load %arg6[%c0_12, %c0_13] : memref<1x128xf32, #tpu.memory_space<vmem>>, vector<1x128xf32>
      %15 = vector.broadcast %14 : vector<1x128xf32> to vector<8x128xf32>
      %16 = arith.addf %13, %15 : vector<8x128xf32>
      %17 = vector.extract_strided_slice %12 {offsets = [0, 128], sizes = [8, 128], strides = [1, 1]} : vector<8x256xf32> to vector<8x128xf32>
      %c0_14 = arith.constant 0 : index
      %c0_15 = arith.constant 0 : index
      %18 = vector.load %arg4[%c0_14, %c0_15] : memref<128x128xf32, #tpu.memory_space<vmem>>, vector<128x128xf32>
      %cst_16 = arith.constant dense<0.000000e+00> : vector<8x128xf32>
      %19 = tpu.matmul %17, %18, %cst_16 {dimension_numbers = #tpu.dot_dimension_numbers<[1], [0], [0], [1], [0, 0, 1, 1], [], []>} : vector<8x128xf32>, vector<128x128xf32>, vector<8x128xf32> -> vector<8x128xf32>
      %c0_17 = arith.constant 0 : index
      %c0_18 = arith.constant 0 : index
      %20 = vector.load %arg7[%c0_17, %c0_18] : memref<1x128xf32, #tpu.memory_space<vmem>>, vector<1x128xf32>
      %21 = vector.broadcast %20 : vector<1x128xf32> to vector<8x128xf32>
      %22 = arith.addf %19, %21 : vector<8x128xf32>
      %cst_19 = arith.constant 0.000000e+00 : f32
      %23 = vector.broadcast %cst_19 : f32 to vector<8x128xf32>
      %24 = arith.maximumf %22, %23 : vector<8x128xf32>
      %c0_20 = arith.constant 0 : index
      %c0_21 = arith.constant 0 : index
      %25 = vector.load %arg5[%c0_20, %c0_21] : memref<128x128xf32, #tpu.memory_space<vmem>>, vector<128x128xf32>
      %cst_22 = arith.constant dense<0.000000e+00> : vector<8x128xf32>
      %26 = tpu.matmul %24, %25, %cst_22 {dimension_numbers = #tpu.dot_dimension_numbers<[1], [0], [0], [1], [0, 0, 1, 1], [], []>} : vector<8x128xf32>, vector<128x128xf32>, vector<8x128xf32> -> vector<8x128xf32>
      %c0_23 = arith.constant 0 : index
      %c0_24 = arith.constant 0 : index
      %27 = vector.load %arg8[%c0_23, %c0_24] : memref<1x128xf32, #tpu.memory_space<vmem>>, vector<1x128xf32>
      %28 = vector.broadcast %27 : vector<1x128xf32> to vector<8x128xf32>
      %29 = arith.addf %26, %28 : vector<8x128xf32>
      %c0_25 = arith.constant 0 : index
      %c0_26 = arith.constant 0 : index
      %30 = vector.load %arg9[%c0_25, %c0_26] : memref<8x384xf32, #tpu.memory_space<vmem>>, vector<8x128xf32>
      tpu.vector_store %arg9[%c0_25, %c0_26], %16 {strides = array<i32>} : memref<8x384xf32, #tpu.memory_space<vmem>>, vector<8x128xf32>,
      %c0_27 = arith.constant 0 : index
      %c128 = arith.constant 128 : index
      %31 = vector.load %arg9[%c0_27, %c128] : memref<8x384xf32, #tpu.memory_space<vmem>>, vector<8x128xf32>
      tpu.vector_store %arg9[%c0_27, %c128], %29 {strides = array<i32>} : memref<8x384xf32, #tpu.memory_space<vmem>>, vector<8x128xf32>,
      %c0_28 = arith.constant 0 : index
      %c256 = arith.constant 256 : index
      %32 = vector.load %arg9[%c0_28, %c256] : memref<8x384xf32, #tpu.memory_space<vmem>>, vector<8x128xf32>
      tpu.vector_store %arg9[%c0_28, %c256], %17 {strides = array<i32>} : memref<8x384xf32, #tpu.memory_space<vmem>>, vector<8x128xf32>,
    } else {
    }
    return
  }
  func.func @transform_0(%arg0: i32, %arg1: i32) -> (i32, i32) {
    %c0_i32 = arith.constant 0 : i32
    return %arg0, %arg1 : i32, i32
  }
  func.func @transform_1(%arg0: i32, %arg1: i32) -> (i32, i32) {
    %c0_i32 = arith.constant 0 : i32
    %c0_i32_0 = arith.constant 0 : i32
    %c0_i32_1 = arith.constant 0 : i32
    return %c0_i32, %c0_i32_0 : i32, i32
  }
  func.func @transform_2(%arg0: i32, %arg1: i32) -> (i32, i32) {
    %c0_i32 = arith.constant 0 : i32
    %c0_i32_0 = arith.constant 0 : i32
    %c0_i32_1 = arith.constant 0 : i32
    return %c0_i32, %c0_i32_0 : i32, i32
  }
  func.func @transform_3(%arg0: i32, %arg1: i32) -> (i32, i32) {
    %c0_i32 = arith.constant 0 : i32
    %c0_i32_0 = arith.constant 0 : i32
    %c0_i32_1 = arith.constant 0 : i32
    return %c0_i32, %c0_i32_0 : i32, i32
  }
  func.func @transform_4(%arg0: i32, %arg1: i32) -> (i32, i32) {
    %c0_i32 = arith.constant 0 : i32
    %c0_i32_0 = arith.constant 0 : i32
    %c0_i32_1 = arith.constant 0 : i32
    return %c0_i32, %c0_i32_0 : i32, i32
  }
  func.func @transform_5(%arg0: i32, %arg1: i32) -> (i32, i32) {
    %c0_i32 = arith.constant 0 : i32
    %c0_i32_0 = arith.constant 0 : i32
    %c0_i32_1 = arith.constant 0 : i32
    return %c0_i32, %c0_i32_0 : i32, i32
  }
  func.func @transform_6(%arg0: i32, %arg1: i32) -> (i32, i32) {
    %c0_i32 = arith.constant 0 : i32
    %c0_i32_0 = arith.constant 0 : i32
    %c0_i32_1 = arith.constant 0 : i32
    return %c0_i32, %c0_i32_0 : i32, i32
  }
  func.func @transform_7(%arg0: i32, %arg1: i32) -> (i32, i32) {
    %c0_i32 = arith.constant 0 : i32
    %c0_i32_0 = arith.constant 0 : i32
    return %arg0, %c0_i32 : i32, i32
  }
}

</mosaic_0001>

<bundles_post_ra>
// kernel: tpu_custom_call.1
= control target key start
LH: loop header
LB: loop body
LE: loop exit
PB: predicated region body
PF: predicated region fallthrough
CT: control target
= control target key end

     0   :  { %12 = vsyncpa [#allocation4], 0  ;;  %s752_s0 = inlined_call_operand.hbm [shape: f32[8,128], index: 0, kind: input, shape index: {}]   ;;  %s753_s1 = inlined_call_operand.hbm [shape: f32[128,256], index: 1, kind: input, shape index: {}]   ;;  %s754_s2 = inlined_call_operand.hbm [shape: f32[128,128], index: 2, kind: input, shape index: {}]   ;;  %s755_s3 = inlined_call_operand.hbm [shape: f32[128,128], index: 3, kind: input, shape index: {}]   ;;  %s756_s4 = inlined_call_operand.vmem [shape: f32[1,128], index: 4, kind: input, shape index: {}]   ;;  %s757_s5 = inlined_call_operand.vmem [shape: f32[1,128], index: 5, kind: input, shape index: {}]   ;;  %s758_s6 = inlined_call_operand.vmem [shape: f32[1,128], index: 6, kind: input, shape index: {}]   ;;  %s759_s7 = inlined_call_operand.hbm [shape: f32[8,384], index: 7, kind: output, shape index: {}]  }
   0x1   :  { %13 = vsyncpa [#allocation7], 0 }
   0x2   :  { %14 = vsyncpa [#allocation10], 0 }
   0x3   :  { %15 = vsyncpa [#allocation5], 0  ;;  %s642_s24 = smov [#allocation6]  }
   0x4   :  { %s31_s25 = sshll.u32 %s642_s24, 4  ;;  %s32_s25 = int_to_ptr.vmem [resolvable:$true] %s31_s25 }
   0x5   :  { %s542_s26 = scalar_lea.vmem %s32_s25, 4096  ;;  %p547_p1 = scmp.lt.s32.totalorder %s32_s25, %s32_s25 }
   0x6   :  { %p543_p0 = scmp.ne.s32.totalorder %s32_s25, %s542_s26  ;;  %p548_p2 = scmp.lt.s32.totalorder %s542_s26, %s542_s26 }
   0x8   :  { %p549_p3 = por %p548_p2, %p547_p1 }
   0xa   :  { %p550_p4 = pnand %p549_p3, %p543_p0 }
   0xc   :  { %553 = shalt.err (!%p550_p4)
}
   0xd   :  { %s643_s27 = smov 256   ;;  %s644_s28 = smov 16  }
   0xe   :  { %37 = dma.hbm_to_vmem [thread:$0]  %s753_s1, 4096, %s32_s25, [#allocation7], %s643_s27, %s643_s27, %s644_s28  }
   0xf   :  { %s645_s8 = smov [#allocation3]   ;;  %s646_s10 = smov [#allocation8]  }
  0x10   :  { %s22_s9 = sshll.u32 %s645_s8, 4  ;;  %s43_s11 = sshll.u32 %s646_s10, 4  ;;  %s23_s9 = int_to_ptr.vmem [resolvable:$true] %s22_s9  ;;  %s44_s11 = int_to_ptr.vmem [resolvable:$true] %s43_s11 }
  0x11   :  { %s562_s12 = scalar_lea.vmem %s23_s9, 128  ;;  %p567_p6 = scmp.lt.s32.totalorder %s23_s9, %s23_s9 }
  0x12   :  { %p563_p5 = scmp.ne.s32.totalorder %s23_s9, %s562_s12  ;;  %p568_p7 = scmp.lt.s32.totalorder %s562_s12, %s562_s12 }
  0x14   :  { %p569_p8 = por %p568_p7, %p567_p6 }
  0x16   :  { %p570_p9 = pnand %p569_p8, %p563_p5 }
  0x18   :  { %573 = shalt.err (!%p570_p9)
}
  0x19   :  { %25 = dma.hbm_to_vmem [thread:$0]  %s752_s0, 128, %s23_s9, [#allocation4]  }
  0x1a   :  { %s582_s15 = scalar_lea.vmem %s44_s11, 2048  ;;  %p587_p11 = scmp.lt.s32.totalorder %s44_s11, %s44_s11 }
  0x1b   :  { %p583_p10 = scmp.ne.s32.totalorder %s44_s11, %s582_s15  ;;  %p588_p12 = scmp.lt.s32.totalorder %s582_s15, %s582_s15 }
  0x1d   :  { %p589_p13 = por %p588_p12, %p587_p11 }
  0x1f   :  { %p590_p0 = pnand %p589_p13, %p583_p10 }
  0x21   :  { %593 = shalt.err (!%p590_p0)
}
  0x22   :  { %s647_s1 = smov 128   ;;  %s648_s16 = smov 8  }
  0x23   :  { %49 = dma.hbm_to_vmem [thread:$0]  %s754_s2, 2048, %s44_s11, [#allocation7], %s647_s1, %s647_s1, %s648_s16  }
  0x24   :  { %s649_s19 = smov [#allocation9]  }
  0x25   :  { %s55_s20 = sshll.u32 %s649_s19, 4  ;;  %s56_s20 = int_to_ptr.vmem [resolvable:$true] %s55_s20 }
  0x26   :  { %s602_s21 = scalar_lea.vmem %s56_s20, 2048  ;;  %p607_p2 = scmp.lt.s32.totalorder %s56_s20, %s56_s20 }
  0x27   :  { %p603_p1 = scmp.ne.s32.totalorder %s56_s20, %s602_s21  ;;  %p608_p3 = scmp.lt.s32.totalorder %s602_s21, %s602_s21 }
  0x29   :  { %p609_p4 = por %p608_p3, %p607_p2 }
  0x2b   :  { %p610_p5 = pnand %p609_p4, %p603_p1 }
  0x2d   :  { %613 = shalt.err (!%p610_p5)
}
  0x2e   :  { %61 = dma.hbm_to_vmem [thread:$0]  %s755_s3, 2048, %s56_s20, [#allocation10], %s647_s1, %s647_s1, %s648_s16  }
  0x2f   :  { %634 = dma.done.wait [#allocation4], 128  }
  0x30   :  { %635 = vsyncadd [#allocation4], 4294967168 }
  0x31   :  { %636 = dma.done.wait [#allocation7], 6144  }
  0x32   :  { %637 = vsyncadd [#allocation7], 4294961152 }
  0x33   :  { %638 = dma.done.wait [#allocation10], 2048  }
  0x34   :  { %639 = vsyncadd [#allocation10], 4294965248  ;;  %v650_v0 = vmov 0.0   ;;  %v120_v1 = vld [vmem:[#allocation6 + $0xf8] sm:$0xff]  ;;  %v119_v2 = vld [vmem:[#allocation6 + $0xf0] sm:$0xff]  ;;  %vm651_vm0 = vmmov 0  }
  0x35   :  { %185 = vmatprep.mubr.f32.mxu0 %v650_v0  ;;  %453 = vmatprep.subr.mxu1 %v650_v0  ;;  %v118_v3 = vld [vmem:[#allocation6 + $0xe8] sm:$0xff]  ;;  %v117_v4 = vld [vmem:[#allocation6 + $0xe0] sm:$0xff]  ;;  %v116_v5 = vld [vmem:[#allocation6 + $0xd8] sm:$0xff]  ;;  %s652_s26 = smov [#allocation11]  }
  0x36   :  { %121 = vmatprep.subr.mxu0 %v120_v1  ;;  %v115_v6 = vld [vmem:[#allocation6 + $0xd0] sm:$0xff]  ;;  %v114_v7 = vld [vmem:[#allocation6 + $0xc8] sm:$0xff]  ;;  %v113_v8 = vld [vmem:[#allocation6 + $0xc0] sm:$0xff]  ;;  %485 = vmatprep.mubr.msk.f32.mxu1 %vm651_vm0, %v650_v0  ;;  %s405_s27 = sshll.u32 %s652_s26, 4  ;;  %s406_s27 = int_to_ptr.vmem [resolvable:$true] %s405_s27 }
  0x37   :  { %122 = vmatpush1.msra.mxu0 %v119_v2  ;;  %v112_v9 = vld [vmem:[#allocation6 + $0xb8] sm:$0xff]  ;;  %v111_v10 = vld [vmem:[#allocation6 + $0xb0] sm:$0xff]  ;;  %v110_v11 = vld [vmem:[#allocation6 + $0xa8] sm:$0xff]  ;;  %s614_s28 = scalar_lea.vmem %s406_s27, 384  ;;  %p619_p7 = scmp.lt.s32.totalorder %s406_s27, %s406_s27 }
  0x38   :  { %123 = vmatprep.subr.mxu0 %v118_v3  ;;  %v109_v12 = vld [vmem:[#allocation6 + $0xa0] sm:$0xff]  ;;  %v108_v13 = vld [vmem:[#allocation6 + $0x98] sm:$0xff]  ;;  %v107_v14 = vld [vmem:[#allocation6 + $0x90] sm:$0xff]  ;;  %p615_p6 = scmp.ne.s32.totalorder %s406_s27, %s614_s28  ;;  %p620_p8 = scmp.lt.s32.totalorder %s614_s28, %s614_s28 }
  0x39   :  { %124 = vmatpush1.msra.mxu0 %v117_v4  ;;  %v224_v15 = vld [vmem:[#allocation8 + $0x78] sm:$0xff]  ;;  %v223_v16 = vld [vmem:[#allocation8 + $0x70] sm:$0xff]  ;;  %v106_v17 = vld [vmem:[#allocation6 + $0x88] sm:$0xff] }
  0x3a   :  { %125 = vmatprep.subr.mxu0 %v116_v5  ;;  %454 = vmatpush3.msra.mxu1 %v224_v15  ;;  %v105_v18 = vld [vmem:[#allocation6 + $0x80] sm:$0xff]  ;;  %v222_v19 = vld [vmem:[#allocation8 + $0x68] sm:$0xff]  ;;  %v104_v20 = vld [vmem:[#allocation6 + $0x78] sm:$0xff]  ;;  %p621_p9 = por %p620_p8, %p619_p7 }
  0x3b   :  { %126 = vmatpush1.msra.mxu0 %v115_v6  ;;  %455 = vmatprep.subr.mxu1 %v650_v0  ;;  %v103_v21 = vld [vmem:[#allocation6 + $0x70] sm:$0xff]  ;;  %v221_v22 = vld [vmem:[#allocation8 + $0x60] sm:$0xff]  ;;  %v102_v23 = vld [vmem:[#allocation6 + $0x68] sm:$0xff] }
  0x3c   :  { %127 = vmatprep.subr.mxu0 %v114_v7  ;;  %456 = vmatpush3.msra.mxu1 %v223_v16  ;;  %v101_v24 = vld [vmem:[#allocation6 + $0x60] sm:$0xff]  ;;  %v220_v25 = vld [vmem:[#allocation8 + $0x58] sm:$0xff]  ;;  %v99_v27 = vld [vmem:[#allocation6 + $0x50] sm:$0xff]  ;;  %p622_p10 = pnand %p621_p9, %p615_p6 }
  0x3d   :  { %128 = vmatpush1.msra.mxu0 %v113_v8  ;;  %457 = vmatprep.subr.mxu1 %v650_v0  ;;  %v100_v26 = vld [vmem:[#allocation6 + $0x58] sm:$0xff]  ;;  %v219_v28 = vld [vmem:[#allocation8 + $0x50] sm:$0xff]  ;;  %v98_v29 = vld [vmem:[#allocation6 + $0x48] sm:$0xff] }
  0x3e   :  { %129 = vmatprep.subr.mxu0 %v112_v9  ;;  %458 = vmatpush3.msra.mxu1 %v222_v19  ;;  %v97_v30 = vld [vmem:[#allocation6 + $0x40] sm:$0xff]  ;;  %v218_v31 = vld [vmem:[#allocation8 + $0x48] sm:$0xff]  ;;  %v96_v32 = vld [vmem:[#allocation6 + $0x38] sm:$0xff] }
  0x3f   :  { %130 = vmatpush1.msra.mxu0 %v111_v10  ;;  %459 = vmatprep.subr.mxu1 %v650_v0  ;;  %v95_v33 = vld [vmem:[#allocation6 + $0x30] sm:$0xff]  ;;  %v217_v34 = vld [vmem:[#allocation8 + $0x40] sm:$0xff]  ;;  %v94_v35 = vld [vmem:[#allocation6 + $0x28] sm:$0xff] }
  0x40   :  { %131 = vmatprep.subr.mxu0 %v110_v11  ;;  %460 = vmatpush3.msra.mxu1 %v221_v22  ;;  %v93_v36 = vld [vmem:[#allocation6 + $0x20] sm:$0xff]  ;;  %v216_v37 = vld [vmem:[#allocation8 + $0x38] sm:$0xff]  ;;  %v91_v39 = vld [vmem:[#allocation6 + $0x10] sm:$0xff] }
  0x41   :  { %132 = vmatpush1.msra.mxu0 %v109_v12  ;;  %461 = vmatprep.subr.mxu1 %v650_v0  ;;  %v92_v38 = vld [vmem:[#allocation6 + $0x18] sm:$0xff]  ;;  %v215_v40 = vld [vmem:[#allocation8 + $0x30] sm:$0xff]  ;;  %v90_v41 = vld [vmem:[#allocation6 + $0x8] sm:$0xff] }
  0x42   :  { %133 = vmatprep.subr.mxu0 %v108_v13  ;;  %462 = vmatpush3.msra.mxu1 %v220_v25  ;;  %v89_v42 = vld [vmem:[#allocation6] sm:$0xff]  ;;  %v214_v43 = vld [vmem:[#allocation8 + $0x28] sm:$0xff]  ;;  %v88_v44 = vld [vmem:[#allocation3] sm:$0xff] }
  0x43   :  { %134 = vmatpush1.msra.mxu0 %v107_v14  ;;  %463 = vmatprep.subr.mxu1 %v650_v0  ;;  %v213_v45 = vld [vmem:[#allocation8 + $0x20] sm:$0xff]  ;;  %v212_v46 = vld [vmem:[#allocation8 + $0x18] sm:$0xff]  ;;  %v211_v47 = vld [vmem:[#allocation8 + $0x10] sm:$0xff] }
  0x44   :  { %135 = vmatprep.subr.mxu0 %v106_v17  ;;  %464 = vmatpush3.msra.mxu1 %v219_v28  ;;  %v210_v48 = vld [vmem:[#allocation8 + $0x8] sm:$0xff]  ;;  %v209_v49 = vld [vmem:[#allocation8] sm:$0xff]  ;;  %v318_v50 = vld [vmem:[#allocation9 + $0x78] sm:$0xff] }
  0x45   :  { %136 = vmatpush1.msra.mxu0 %v105_v18  ;;  %465 = vmatprep.subr.mxu1 %v650_v0  ;;  %v317_v51 = vld [vmem:[#allocation9 + $0x70] sm:$0xff]  ;;  %v316_v52 = vld [vmem:[#allocation9 + $0x68] sm:$0xff]  ;;  %v315_v53 = vld [vmem:[#allocation9 + $0x60] sm:$0xff] }
  0x46   :  { %137 = vmatprep.subr.mxu0 %v104_v20  ;;  %466 = vmatpush3.msra.mxu1 %v218_v31  ;;  %v314_v54 = vld [vmem:[#allocation9 + $0x58] sm:$0xff]  ;;  %v313_v55 = vld [vmem:[#allocation9 + $0x50] sm:$0xff]  ;;  %v312_v56 = vld [vmem:[#allocation9 + $0x48] sm:$0xff] }
  0x47   :  { %138 = vmatpush1.msra.mxu0 %v103_v21  ;;  %467 = vmatprep.subr.mxu1 %v650_v0  ;;  %v311_v57 = vld [vmem:[#allocation9 + $0x40] sm:$0xff]  ;;  %v310_v58 = vld [vmem:[#allocation9 + $0x38] sm:$0xff]  ;;  %v309_v59 = vld [vmem:[#allocation9 + $0x30] sm:$0xff] }
  0x48   :  { %139 = vmatprep.subr.mxu0 %v102_v23  ;;  %468 = vmatpush3.msra.mxu1 %v217_v34  ;;  %v308_v60 = vld [vmem:[#allocation9 + $0x28] sm:$0xff]  ;;  %v307_v61 = vld [vmem:[#allocation9 + $0x20] sm:$0xff]  ;;  %v306_v62 = vld [vmem:[#allocation9 + $0x18] sm:$0xff] }
  0x49   :  { %140 = vmatpush1.msra.mxu0 %v101_v24  ;;  %469 = vmatprep.subr.mxu1 %v650_v0  ;;  %v416_v63 = vld [vmem:[%s756_s4] ss:$0 sm:$0xff]  ;;  %v305_v4 = vld [vmem:[#allocation9 + $0x10] sm:$0xff]  ;;  %v304_v5 = vld [vmem:[#allocation9 + $0x8] sm:$0xff] }
  0x4a   :  { %141 = vmatprep.subr.mxu0 %v100_v26  ;;  %470 = vmatpush3.msra.mxu1 %v216_v37  ;;  %v303_v6 = vld [vmem:[#allocation9] sm:$0xff]  ;;  %v417_v7 = vld [vmem:[%s757_s5] ss:$0 sm:$0xff] }
  0x4b   :  { %142 = vmatpush1.msra.mxu0 %v99_v27  ;;  %471 = vmatprep.subr.mxu1 %v650_v0  ;;  %v418_v12 = vld [vmem:[%s758_s6] ss:$0 sm:$0xff] }
  0x4c   :  { %143 = vmatprep.subr.mxu0 %v98_v29  ;;  %472 = vmatpush3.msra.mxu1 %v215_v40 }
  0x4d   :  { %144 = vmatpush1.msra.mxu0 %v97_v30  ;;  %473 = vmatprep.subr.mxu1 %v650_v0 }
  0x4e   :  { %145 = vmatprep.subr.mxu0 %v96_v32  ;;  %474 = vmatpush3.msra.mxu1 %v214_v43 }
  0x4f   :  { %146 = vmatpush1.msra.mxu0 %v95_v33  ;;  %475 = vmatprep.subr.mxu1 %v650_v0 }
  0x50   :  { %147 = vmatprep.subr.mxu0 %v94_v35  ;;  %476 = vmatpush3.msra.mxu1 %v213_v45 }
  0x51   :  { %148 = vmatpush1.msra.mxu0 %v93_v36  ;;  %477 = vmatprep.subr.mxu1 %v650_v0 }
  0x52   :  { %149 = vmatprep.subr.mxu0 %v92_v38  ;;  %478 = vmatpush3.msra.mxu1 %v212_v46 }
  0x53   :  { %150 = vmatpush1.msra.mxu0 %v91_v39  ;;  %479 = vmatprep.subr.mxu1 %v650_v0 }
  0x54   :  { %151 = vmatprep.subr.mxu0 %v90_v41  ;;  %480 = vmatpush3.msra.mxu1 %v211_v47 }
  0x55   :  { %152 = vmatpush1.msra.mxu0 %v89_v42  ;;  %481 = vmatprep.subr.mxu1 %v650_v0 }
  0x56   :  { %186 = vmatmul.mubr.f32.vlgmr.msra.gmra.mxu0 %v88_v44  ;;  %488 = vmatprep.subr.mxu0 %v650_v0 }
  0x57   :  { %482 = vmatpush3.msra.mxu1 %v210_v48  ;;  %520 = vmatprep.mubr.msk.f32.mxu0 %vm651_vm0, %v650_v0 }
  0x58   :  { %483 = vmatprep.subr.mxu1 %v650_v0  ;;  %489 = vmatpush3.msra.mxu0 %v318_v50 }
  0x59   :  { %484 = vmatpush3.msra.mxu1 %v209_v49  ;;  %490 = vmatprep.subr.mxu0 %v650_v0 }
  0x5a   :  { %491 = vmatpush3.msra.mxu0 %v317_v51 }
  0x5b   :  { %492 = vmatprep.subr.mxu0 %v650_v0 }
  0x5c   :  { %493 = vmatpush3.msra.mxu0 %v316_v52 }
  0x5d   :  { %494 = vmatprep.subr.mxu0 %v650_v0 }
  0x5e   :  { %495 = vmatpush3.msra.mxu0 %v315_v53 }
  0x5f   :  { %496 = vmatprep.subr.mxu0 %v650_v0 }
  0x60   :  { %497 = vmatpush3.msra.mxu0 %v314_v54 }
  0x61   :  { %498 = vmatprep.subr.mxu0 %v650_v0 }
  0x62   :  { %499 = vmatpush3.msra.mxu0 %v313_v55 }
  0x63   :  { %500 = vmatprep.subr.mxu0 %v650_v0 }
  0x64   :  { %501 = vmatpush3.msra.mxu0 %v312_v56 }
  0x65   :  { %502 = vmatprep.subr.mxu0 %v650_v0 }
  0x66   :  { %503 = vmatpush3.msra.mxu0 %v311_v57 }
  0x67   :  { %504 = vmatprep.subr.mxu0 %v650_v0 }
  0x68   :  { %505 = vmatpush3.msra.mxu0 %v310_v58 }
  0x69   :  { %506 = vmatprep.subr.mxu0 %v650_v0 }
  0x6a   :  { %507 = vmatpush3.msra.mxu0 %v309_v59 }
  0x6b   :  { %508 = vmatprep.subr.mxu0 %v650_v0 }
  0x6c   :  { %509 = vmatpush3.msra.mxu0 %v308_v60 }
  0x6d   :  { %510 = vmatprep.subr.mxu0 %v650_v0 }
  0x6e   :  { %511 = vmatpush3.msra.mxu0 %v307_v61 }
  0x6f   :  { %512 = vmatprep.subr.mxu0 %v650_v0 }
  0x70   :  { %513 = vmatpush3.msra.mxu0 %v306_v62 }
  0x71   :  { %514 = vmatprep.subr.mxu0 %v650_v0 }
  0x72   :  { %515 = vmatpush3.msra.mxu0 %v305_v4 }
  0x73   :  { %516 = vmatprep.subr.mxu0 %v650_v0 }
  0x74   :  { %517 = vmatpush3.msra.mxu0 %v304_v5 }
  0x75   :  { %518 = vmatprep.subr.mxu0 %v650_v0 }
  0x76   :  { %519 = vmatpush3.msra.mxu0 %v303_v6 }
 0x116   :  { %v187_v1 = vpop.f32.mrf.mxu0 }
 0x117   :  { %v208_v2 = vadd.f32 %v416_v63, %v187_v1 }
 0x118   :  { %v189_v3 = vpop.f32.mrf.mxu0 }
 0x119   :  { %396 = vst [vmem:[#allocation11] sm:$0xff] %v208_v2  ;;  %398 = vst [vmem:[#allocation11 + $0x10] sm:$0xff] %v189_v3  ;;  %486 = vmatmul.mubr.f32.vlgmr.msra.gmra.mxu1 %v189_v3 }
 0x1d9   :  { %v298_v8 = vpop.f32.mrf.mxu1 }
 0x1da   :  { %v299_v9 = vadd.f32 %v417_v7, %v298_v8 }
 0x1db   :  { %v487_v10 = vpop.f32.mrf.mxu1 }
 0x1dc   :  { %v302_v11 = vmax.f32 %v299_v9, 0.0 }
 0x1de   :  { %521 = vmatmul.mubr.f32.vlgmr.msra.gmra.mxu0 %v302_v11 }
 0x29e   :  { %v392_v13 = vpop.f32.mrf.mxu0 }
 0x29f   :  { %v393_v14 = vadd.f32 %v418_v12, %v392_v13 }
 0x2a0   :  { %v522_v0 = vpop.f32.mrf.mxu0 }
 0x2a1   :  { %397 = vst [vmem:[#allocation11 + $0x8] sm:$0xff] %v393_v14 }
 0x2a2   :  { %625 = shalt.err (!%p622_p10)
}
 0x2a3   :  { %408 = dma.vmem_to_hbm [thread:$0]  %s406_s27, 384, %s759_s7, [#allocation5]  }
 0x2a4   :  { %640 = dma.done.wait [#allocation5], 384  }
 0x2a5   :  { %641 = vsyncadd [#allocation5], 4294966912 }
 0x2a6   :  { %412 = vsyncpa [#allocation4], 1 }
 0x2a7   :  { %413 = vsyncpa [#allocation7], 1 }
 0x2a8   :  { %414 = vsyncpa [#allocation10], 1 }
 0x2a9   :  { %415 = vsyncpa [#allocation5], 1 }

// kernel: tpu_custom_call.1
= control target key start
LH: loop header
LB: loop body
LE: loop exit
PB: predicated region body
PF: predicated region fallthrough
CT: control target
= control target key end

     0   :  { %12 = vsyncpa [#allocation4], 0  ;;  %s752_s0 = inlined_call_operand.hbm [shape: f32[8,128], index: 0, kind: input, shape index: {}]   ;;  %s753_s1 = inlined_call_operand.hbm [shape: f32[128,256], index: 1, kind: input, shape index: {}]   ;;  %s754_s2 = inlined_call_operand.hbm [shape: f32[128,128], index: 2, kind: input, shape index: {}]   ;;  %s755_s3 = inlined_call_operand.hbm [shape: f32[128,128], index: 3, kind: input, shape index: {}]   ;;  %s756_s4 = inlined_call_operand.vmem [shape: f32[1,128], index: 4, kind: input, shape index: {}]   ;;  %s757_s5 = inlined_call_operand.vmem [shape: f32[1,128], index: 5, kind: input, shape index: {}]   ;;  %s758_s6 = inlined_call_operand.vmem [shape: f32[1,128], index: 6, kind: input, shape index: {}]   ;;  %s759_s7 = inlined_call_operand.hbm [shape: f32[8,384], index: 7, kind: output, shape index: {}]  }
   0x1   :  { %13 = vsyncpa [#allocation7], 0 }
   0x2   :  { %14 = vsyncpa [#allocation10], 0 }
   0x3   :  { %15 = vsyncpa [#allocation5], 0  ;;  %s642_s24 = smov [#allocation6]  }
   0x4   :  { %s31_s25 = sshll.u32 %s642_s24, 4  ;;  %s32_s25 = int_to_ptr.vmem [resolvable:$true] %s31_s25 }
   0x5   :  { %s542_s26 = scalar_lea.vmem %s32_s25, 4096  ;;  %p547_p1 = scmp.lt.s32.totalorder %s32_s25, %s32_s25 }
   0x6   :  { %p543_p0 = scmp.ne.s32.totalorder %s32_s25, %s542_s26  ;;  %p548_p2 = scmp.lt.s32.totalorder %s542_s26, %s542_s26 }
   0x8   :  { %p549_p3 = por %p548_p2, %p547_p1 }
   0xa   :  { %p550_p4 = pnand %p549_p3, %p543_p0 }
   0xc   :  { %553 = shalt.err (!%p550_p4)
}
   0xd   :  { %s643_s27 = smov 256   ;;  %s644_s28 = smov 16  }
   0xe   :  { %37 = dma.hbm_to_vmem [thread:$0]  %s753_s1, 4096, %s32_s25, [#allocation7], %s643_s27, %s643_s27, %s644_s28  }
   0xf   :  { %s645_s8 = smov [#allocation3]   ;;  %s646_s10 = smov [#allocation8]  }
  0x10   :  { %s22_s9 = sshll.u32 %s645_s8, 4  ;;  %s43_s11 = sshll.u32 %s646_s10, 4  ;;  %s23_s9 = int_to_ptr.vmem [resolvable:$true] %s22_s9  ;;  %s44_s11 = int_to_ptr.vmem [resolvable:$true] %s43_s11 }
  0x11   :  { %s562_s12 = scalar_lea.vmem %s23_s9, 128  ;;  %p567_p6 = scmp.lt.s32.totalorder %s23_s9, %s23_s9 }
  0x12   :  { %p563_p5 = scmp.ne.s32.totalorder %s23_s9, %s562_s12  ;;  %p568_p7 = scmp.lt.s32.totalorder %s562_s12, %s562_s12 }
  0x14   :  { %p569_p8 = por %p568_p7, %p567_p6 }
  0x16   :  { %p570_p9 = pnand %p569_p8, %p563_p5 }
  0x18   :  { %573 = shalt.err (!%p570_p9)
}
  0x19   :  { %25 = dma.hbm_to_vmem [thread:$0]  %s752_s0, 128, %s23_s9, [#allocation4]  }
  0x1a   :  { %s582_s15 = scalar_lea.vmem %s44_s11, 2048  ;;  %p587_p11 = scmp.lt.s32.totalorder %s44_s11, %s44_s11 }
  0x1b   :  { %p583_p10 = scmp.ne.s32.totalorder %s44_s11, %s582_s15  ;;  %p588_p12 = scmp.lt.s32.totalorder %s582_s15, %s582_s15 }
  0x1d   :  { %p589_p13 = por %p588_p12, %p587_p11 }
  0x1f   :  { %p590_p0 = pnand %p589_p13, %p583_p10 }
  0x21   :  { %593 = shalt.err (!%p590_p0)
}
  0x22   :  { %s647_s1 = smov 128   ;;  %s648_s16 = smov 8  }
  0x23   :  { %49 = dma.hbm_to_vmem [thread:$0]  %s754_s2, 2048, %s44_s11, [#allocation7], %s647_s1, %s647_s1, %s648_s16  }
  0x24   :  { %s649_s19 = smov [#allocation9]  }
  0x25   :  { %s55_s20 = sshll.u32 %s649_s19, 4  ;;  %s56_s20 = int_to_ptr.vmem [resolvable:$true] %s55_s20 }
  0x26   :  { %s602_s21 = scalar_lea.vmem %s56_s20, 2048  ;;  %p607_p2 = scmp.lt.s32.totalorder %s56_s20, %s56_s20 }
  0x27   :  { %p603_p1 = scmp.ne.s32.totalorder %s56_s20, %s602_s21  ;;  %p608_p3 = scmp.lt.s32.totalorder %s602_s21, %s602_s21 }
  0x29   :  { %p609_p4 = por %p608_p3, %p607_p2 }
  0x2b   :  { %p610_p5 = pnand %p609_p4, %p603_p1 }
  0x2d   :  { %613 = shalt.err (!%p610_p5)
}
  0x2e   :  { %61 = dma.hbm_to_vmem [thread:$0]  %s755_s3, 2048, %s56_s20, [#allocation10], %s647_s1, %s647_s1, %s648_s16  }
  0x2f   :  { %634 = dma.done.wait [#allocation4], 128  }
  0x30   :  { %635 = vsyncadd [#allocation4], 4294967168 }
  0x31   :  { %636 = dma.done.wait [#allocation7], 6144  }
  0x32   :  { %637 = vsyncadd [#allocation7], 4294961152 }
  0x33   :  { %638 = dma.done.wait [#allocation10], 2048  }
  0x34   :  { %639 = vsyncadd [#allocation10], 4294965248  ;;  %v650_v0 = vmov 0.0   ;;  %v120_v1 = vld [vmem:[#allocation6 + $0xf8] sm:$0xff]  ;;  %v119_v2 = vld [vmem:[#allocation6 + $0xf0] sm:$0xff]  ;;  %vm651_vm0 = vmmov 0  }
  0x35   :  { %185 = vmatprep.mubr.f32.mxu0 %v650_v0  ;;  %453 = vmatprep.subr.mxu1 %v650_v0  ;;  %v118_v3 = vld [vmem:[#allocation6 + $0xe8] sm:$0xff]  ;;  %v117_v4 = vld [vmem:[#allocation6 + $0xe0] sm:$0xff]  ;;  %v116_v5 = vld [vmem:[#allocation6 + $0xd8] sm:$0xff]  ;;  %s652_s26 = smov [#allocation11]  }
  0x36   :  { %121 = vmatprep.subr.mxu0 %v120_v1  ;;  %v115_v6 = vld [vmem:[#allocation6 + $0xd0] sm:$0xff]  ;;  %v114_v7 = vld [vmem:[#allocation6 + $0xc8] sm:$0xff]  ;;  %v113_v8 = vld [vmem:[#allocation6 + $0xc0] sm:$0xff]  ;;  %485 = vmatprep.mubr.msk.f32.mxu1 %vm651_vm0, %v650_v0  ;;  %s405_s27 = sshll.u32 %s652_s26, 4  ;;  %s406_s27 = int_to_ptr.vmem [resolvable:$true] %s405_s27 }
  0x37   :  { %122 = vmatpush1.msra.mxu0 %v119_v2  ;;  %v112_v9 = vld [vmem:[#allocation6 + $0xb8] sm:$0xff]  ;;  %v111_v10 = vld [vmem:[#allocation6 + $0xb0] sm:$0xff]  ;;  %v110_v11 = vld [vmem:[#allocation6 + $0xa8] sm:$0xff]  ;;  %s614_s28 = scalar_lea.vmem %s406_s27, 384  ;;  %p619_p7 = scmp.lt.s32.totalorder %s406_s27, %s406_s27 }
  0x38   :  { %123 = vmatprep.subr.mxu0 %v118_v3  ;;  %v109_v12 = vld [vmem:[#allocation6 + $0xa0] sm:$0xff]  ;;  %v108_v13 = vld [vmem:[#allocation6 + $0x98] sm:$0xff]  ;;  %v107_v14 = vld [vmem:[#allocation6 + $0x90] sm:$0xff]  ;;  %p615_p6 = scmp.ne.s32.totalorder %s406_s27, %s614_s28  ;;  %p620_p8 = scmp.lt.s32.totalorder %s614_s28, %s614_s28 }
  0x39   :  { %124 = vmatpush1.msra.mxu0 %v117_v4  ;;  %v224_v15 = vld [vmem:[#allocation8 + $0x78] sm:$0xff]  ;;  %v223_v16 = vld [vmem:[#allocation8 + $0x70] sm:$0xff]  ;;  %v106_v17 = vld [vmem:[#allocation6 + $0x88] sm:$0xff] }
  0x3a   :  { %125 = vmatprep.subr.mxu0 %v116_v5  ;;  %454 = vmatpush3.msra.mxu1 %v224_v15  ;;  %v105_v18 = vld [vmem:[#allocation6 + $0x80] sm:$0xff]  ;;  %v222_v19 = vld [vmem:[#allocation8 + $0x68] sm:$0xff]  ;;  %v104_v20 = vld [vmem:[#allocation6 + $0x78] sm:$0xff]  ;;  %p621_p9 = por %p620_p8, %p619_p7 }
  0x3b   :  { %126 = vmatpush1.msra.mxu0 %v115_v6  ;;  %455 = vmatprep.subr.mxu1 %v650_v0  ;;  %v103_v21 = vld [vmem:[#allocation6 + $0x70] sm:$0xff]  ;;  %v221_v22 = vld [vmem:[#allocation8 + $0x60] sm:$0xff]  ;;  %v102_v23 = vld [vmem:[#allocation6 + $0x68] sm:$0xff] }
  0x3c   :  { %127 = vmatprep.subr.mxu0 %v114_v7  ;;  %456 = vmatpush3.msra.mxu1 %v223_v16  ;;  %v101_v24 = vld [vmem:[#allocation6 + $0x60] sm:$0xff]  ;;  %v220_v25 = vld [vmem:[#allocation8 + $0x58] sm:$0xff]  ;;  %v99_v27 = vld [vmem:[#allocation6 + $0x50] sm:$0xff]  ;;  %p622_p10 = pnand %p621_p9, %p615_p6 }
  0x3d   :  { %128 = vmatpush1.msra.mxu0 %v113_v8  ;;  %457 = vmatprep.subr.mxu1 %v650_v0  ;;  %v100_v26 = vld [vmem:[#allocation6 + $0x58] sm:$0xff]  ;;  %v219_v28 = vld [vmem:[#allocation8 + $0x50] sm:$0xff]  ;;  %v98_v29 = vld [vmem:[#allocation6 + $0x48] sm:$0xff] }
  0x3e   :  { %129 = vmatprep.subr.mxu0 %v112_v9  ;;  %458 = vmatpush3.msra.mxu1 %v222_v19  ;;  %v97_v30 = vld [vmem:[#allocation6 + $0x40] sm:$0xff]  ;;  %v218_v31 = vld [vmem:[#allocation8 + $0x48] sm:$0xff]  ;;  %v96_v32 = vld [vmem:[#allocation6 + $0x38] sm:$0xff] }
  0x3f   :  { %130 = vmatpush1.msra.mxu0 %v111_v10  ;;  %459 = vmatprep.subr.mxu1 %v650_v0  ;;  %v95_v33 = vld [vmem:[#allocation6 + $0x30] sm:$0xff]  ;;  %v217_v34 = vld [vmem:[#allocation8 + $0x40] sm:$0xff]  ;;  %v94_v35 = vld [vmem:[#allocation6 + $0x28] sm:$0xff] }
  0x40   :  { %131 = vmatprep.subr.mxu0 %v110_v11  ;;  %460 = vmatpush3.msra.mxu1 %v221_v22  ;;  %v93_v36 = vld [vmem:[#allocation6 + $0x20] sm:$0xff]  ;;  %v216_v37 = vld [vmem:[#allocation8 + $0x38] sm:$0xff]  ;;  %v91_v39 = vld [vmem:[#allocation6 + $0x10] sm:$0xff] }
  0x41   :  { %132 = vmatpush1.msra.mxu0 %v109_v12  ;;  %461 = vmatprep.subr.mxu1 %v650_v0  ;;  %v92_v38 = vld [vmem:[#allocation6 + $0x18] sm:$0xff]  ;;  %v215_v40 = vld [vmem:[#allocation8 + $0x30] sm:$0xff]  ;;  %v90_v41 = vld [vmem:[#allocation6 + $0x8] sm:$0xff] }
  0x42   :  { %133 = vmatprep.subr.mxu0 %v108_v13  ;;  %462 = vmatpush3.msra.mxu1 %v220_v25  ;;  %v89_v42 = vld [vmem:[#allocation6] sm:$0xff]  ;;  %v214_v43 = vld [vmem:[#allocation8 + $0x28] sm:$0xff]  ;;  %v88_v44 = vld [vmem:[#allocation3] sm:$0xff] }
  0x43   :  { %134 = vmatpush1.msra.mxu0 %v107_v14  ;;  %463 = vmatprep.subr.mxu1 %v650_v0  ;;  %v213_v45 = vld [vmem:[#allocation8 + $0x20] sm:$0xff]  ;;  %v212_v46 = vld [vmem:[#allocation8 + $0x18] sm:$0xff]  ;;  %v211_v47 = vld [vmem:[#allocation8 + $0x10] sm:$0xff] }
  0x44   :  { %135 = vmatprep.subr.mxu0 %v106_v17  ;;  %464 = vmatpush3.msra.mxu1 %v219_v28  ;;  %v210_v48 = vld [vmem:[#allocation8 + $0x8] sm:$0xff]  ;;  %v209_v49 = vld [vmem:[#allocation8] sm:$0xff]  ;;  %v318_v50 = vld [vmem:[#allocation9 + $0x78] sm:$0xff] }
  0x45   :  { %136 = vmatpush1.msra.mxu0 %v105_v18  ;;  %465 = vmatprep.subr.mxu1 %v650_v0  ;;  %v317_v51 = vld [vmem:[#allocation9 + $0x70] sm:$0xff]  ;;  %v316_v52 = vld [vmem:[#allocation9 + $0x68] sm:$0xff]  ;;  %v315_v53 = vld [vmem:[#allocation9 + $0x60] sm:$0xff] }
  0x46   :  { %137 = vmatprep.subr.mxu0 %v104_v20  ;;  %466 = vmatpush3.msra.mxu1 %v218_v31  ;;  %v314_v54 = vld [vmem:[#allocation9 + $0x58] sm:$0xff]  ;;  %v313_v55 = vld [vmem:[#allocation9 + $0x50] sm:$0xff]  ;;  %v312_v56 = vld [vmem:[#allocation9 + $0x48] sm:$0xff] }
  0x47   :  { %138 = vmatpush1.msra.mxu0 %v103_v21  ;;  %467 = vmatprep.subr.mxu1 %v650_v0  ;;  %v311_v57 = vld [vmem:[#allocation9 + $0x40] sm:$0xff]  ;;  %v310_v58 = vld [vmem:[#allocation9 + $0x38] sm:$0xff]  ;;  %v309_v59 = vld [vmem:[#allocation9 + $0x30] sm:$0xff] }
  0x48   :  { %139 = vmatprep.subr.mxu0 %v102_v23  ;;  %468 = vmatpush3.msra.mxu1 %v217_v34  ;;  %v308_v60 = vld [vmem:[#allocation9 + $0x28] sm:$0xff]  ;;  %v307_v61 = vld [vmem:[#allocation9 + $0x20] sm:$0xff]  ;;  %v306_v62 = vld [vmem:[#allocation9 + $0x18] sm:$0xff] }
  0x49   :  { %140 = vmatpush1.msra.mxu0 %v101_v24  ;;  %469 = vmatprep.subr.mxu1 %v650_v0  ;;  %v416_v63 = vld [vmem:[%s756_s4] ss:$0 sm:$0xff]  ;;  %v305_v4 = vld [vmem:[#allocation9 + $0x10] sm:$0xff]  ;;  %v304_v5 = vld [vmem:[#allocation9 + $0x8] sm:$0xff] }
  0x4a   :  { %141 = vmatprep.subr.mxu0 %v100_v26  ;;  %470 = vmatpush3.msra.mxu1 %v216_v37  ;;  %v303_v6 = vld [vmem:[#allocation9] sm:$0xff]  ;;  %v417_v7 = vld [vmem:[%s757_s5] ss:$0 sm:$0xff] }
  0x4b   :  { %142 = vmatpush1.msra.mxu0 %v99_v27  ;;  %471 = vmatprep.subr.mxu1 %v650_v0  ;;  %v418_v12 = vld [vmem:[%s758_s6] ss:$0 sm:$0xff] }
  0x4c   :  { %143 = vmatprep.subr.mxu0 %v98_v29  ;;  %472 = vmatpush3.msra.mxu1 %v215_v40 }
  0x4d   :  { %144 = vmatpush1.msra.mxu0 %v97_v30  ;;  %473 = vmatprep.subr.mxu1 %v650_v0 }
  0x4e   :  { %145 = vmatprep.subr.mxu0 %v96_v32  ;;  %474 = vmatpush3.msra.mxu1 %v214_v43 }
  0x4f   :  { %146 = vmatpush1.msra.mxu0 %v95_v33  ;;  %475 = vmatprep.subr.mxu1 %v650_v0 }
  0x50   :  { %147 = vmatprep.subr.mxu0 %v94_v35  ;;  %476 = vmatpush3.msra.mxu1 %v213_v45 }
  0x51   :  { %148 = vmatpush1.msra.mxu0 %v93_v36  ;;  %477 = vmatprep.subr.mxu1 %v650_v0 }
  0x52   :  { %149 = vmatprep.subr.mxu0 %v92_v38  ;;  %478 = vmatpush3.msra.mxu1 %v212_v46 }
  0x53   :  { %150 = vmatpush1.msra.mxu0 %v91_v39  ;;  %479 = vmatprep.subr.mxu1 %v650_v0 }
  0x54   :  { %151 = vmatprep.subr.mxu0 %v90_v41  ;;  %480 = vmatpush3.msra.mxu1 %v211_v47 }
  0x55   :  { %152 = vmatpush1.msra.mxu0 %v89_v42  ;;  %481 = vmatprep.subr.mxu1 %v650_v0 }
  0x56   :  { %186 = vmatmul.mubr.f32.vlgmr.msra.gmra.mxu0 %v88_v44  ;;  %488 = vmatprep.subr.mxu0 %v650_v0 }
  0x57   :  { %482 = vmatpush3.msra.mxu1 %v210_v48  ;;  %520 = vmatprep.mubr.msk.f32.mxu0 %vm651_vm0, %v650_v0 }
  0x58   :  { %483 = vmatprep.subr.mxu1 %v650_v0  ;;  %489 = vmatpush3.msra.mxu0 %v318_v50 }
  0x59   :  { %484 = vmatpush3.msra.mxu1 %v209_v49  ;;  %490 = vmatprep.subr.mxu0 %v650_v0 }
  0x5a   :  { %491 = vmatpush3.msra.mxu0 %v317_v51 }
  0x5b   :  { %492 = vmatprep.subr.mxu0 %v650_v0 }
  0x5c   :  { %493 = vmatpush3.msra.mxu0 %v316_v52 }
  0x5d   :  { %494 = vmatprep.subr.mxu0 %v650_v0 }
  0x5e   :  { %495 = vmatpush3.msra.mxu0 %v315_v53 }
  0x5f   :  { %496 = vmatprep.subr.mxu0 %v650_v0 }
  0x60   :  { %497 = vmatpush3.msra.mxu0 %v314_v54 }
  0x61   :  { %498 = vmatprep.subr.mxu0 %v650_v0 }
  0x62   :  { %499 = vmatpush3.msra.mxu0 %v313_v55 }
  0x63   :  { %500 = vmatprep.subr.mxu0 %v650_v0 }
  0x64   :  { %501 = vmatpush3.msra.mxu0 %v312_v56 }
  0x65   :  { %502 = vmatprep.subr.mxu0 %v650_v0 }
  0x66   :  { %503 = vmatpush3.msra.mxu0 %v311_v57 }
  0x67   :  { %504 = vmatprep.subr.mxu0 %v650_v0 }
  0x68   :  { %505 = vmatpush3.msra.mxu0 %v310_v58 }
  0x69   :  { %506 = vmatprep.subr.mxu0 %v650_v0 }
  0x6a   :  { %507 = vmatpush3.msra.mxu0 %v309_v59 }
  0x6b   :  { %508 = vmatprep.subr.mxu0 %v650_v0 }
  0x6c   :  { %509 = vmatpush3.msra.mxu0 %v308_v60 }
  0x6d   :  { %510 = vmatprep.subr.mxu0 %v650_v0 }
  0x6e   :  { %511 = vmatpush3.msra.mxu0 %v307_v61 }
  0x6f   :  { %512 = vmatprep.subr.mxu0 %v650_v0 }
  0x70   :  { %513 = vmatpush3.msra.mxu0 %v306_v62 }
  0x71   :  { %514 = vmatprep.subr.mxu0 %v650_v0 }
  0x72   :  { %515 = vmatpush3.msra.mxu0 %v305_v4 }
  0x73   :  { %516 = vmatprep.subr.mxu0 %v650_v0 }
  0x74   :  { %517 = vmatpush3.msra.mxu0 %v304_v5 }
  0x75   :  { %518 = vmatprep.subr.mxu0 %v650_v0 }
  0x76   :  { %519 = vmatpush3.msra.mxu0 %v303_v6 }
 0x116   :  { %v187_v1 = vpop.f32.mrf.mxu0 }
 0x117   :  { %v208_v2 = vadd.f32 %v416_v63, %v187_v1 }
 0x118   :  { %v189_v3 = vpop.f32.mrf.mxu0 }
 0x119   :  { %396 = vst [vmem:[#allocation11] sm:$0xff] %v208_v2  ;;  %398 = vst [vmem:[#allocation11 + $0x10] sm:$0xff] %v189_v3  ;;  %486 = vmatmul.mubr.f32.vlgmr.msra.gmra.mxu1 %v189_v3 }
 0x1d9   :  { %v298_v8 = vpop.f32.mrf.mxu1 }
 0x1da   :  { %v299_v9 = vadd.f32 %v417_v7, %v298_v8 }
 0x1db   :  { %v487_v10 = vpop.f32.mrf.mxu1 }
 0x1dc   :  { %v302_v11 = vmax.f32 %v299_v9, 0.0 }
 0x1de   :  { %521 = vmatmul.mubr.f32.vlgmr.msra.gmra.mxu0 %v302_v11 }
 0x29e   :  { %v392_v13 = vpop.f32.mrf.mxu0 }
 0x29f   :  { %v393_v14 = vadd.f32 %v418_v12, %v392_v13 }
 0x2a0   :  { %v522_v0 = vpop.f32.mrf.mxu0 }
 0x2a1   :  { %397 = vst [vmem:[#allocation11 + $0x8] sm:$0xff] %v393_v14 }
 0x2a2   :  { %625 = shalt.err (!%p622_p10)
}
 0x2a3   :  { %408 = dma.vmem_to_hbm [thread:$0]  %s406_s27, 384, %s759_s7, [#allocation5]  }
 0x2a4   :  { %640 = dma.done.wait [#allocation5], 384  }
 0x2a5   :  { %641 = vsyncadd [#allocation5], 4294966912 }
 0x2a6   :  { %412 = vsyncpa [#allocation4], 1 }
 0x2a7   :  { %413 = vsyncpa [#allocation7], 1 }
 0x2a8   :  { %414 = vsyncpa [#allocation10], 1 }
 0x2a9   :  { %415 = vsyncpa [#allocation5], 1 }

</bundles_post_ra>
